<compile_context>
chip_gen: v5e
topology: v5e:2x2
jax: 0.10.0
libtpu: 0.0.40
codegen_flags: <defaults>
</compile_context>

<pallas_src>
import functools

import jax
import jax.numpy as jnp
from jax.experimental import pallas as pl
from jax.experimental.pallas import tpu as pltpu


def _round_up(n, m):
    return ((n + m - 1) // m) * m


def x3d_pool_kernel(x_ref, w1_ref, b_ref, o_ref, acc_ref, *,
                    s_valid, inv_s, ragged):
    """conv_5 (BN-scale folded) + BN bias + ReLU + streamed global avg-pool.

    x_ref : (C, tile_s)   f32   activation tile (cast to bf16 in-kernel)
    w1_ref: (Din_p, C)    bf16  conv_5 weight, BN scale folded, pre-transposed
    b_ref : (Din_p, 1)    f32   BN bias (eval-folded)
    o_ref : (Din_p, 1)    f32   per-(batch, split) pooled partial
    acc   : (Din_p, 1)    f32   running sum over S
    """
    k = pl.program_id(2)
    nbi = pl.num_programs(2)

    @pl.when(k == 0)
    def _():
        acc_ref[...] = jnp.zeros_like(acc_ref)

    # In-kernel bf16 cast (VPU, hidden under the MXU); canonical (M,K)@(K,N).
    xb = x_ref[...].astype(jnp.bfloat16)
    h = jnp.dot(w1_ref[...], xb, preferred_element_type=jnp.float32)
    h = jnp.maximum(h + b_ref[...], 0.0)          # (Din_p, tile_s), single pass

    if ragged:
        tile_s = x_ref.shape[1]
        gblk = pl.program_id(1) * nbi + k          # global S-block index
        start = gblk * tile_s
        full = start + tile_s <= s_valid

        @pl.when(full)
        def _():                                   # hot path: no mask at all
            acc_ref[...] += jnp.sum(h, axis=1, keepdims=True)

        @pl.when(jnp.logical_not(full))
        def _():                                   # ragged / clamped-OOB block
            col = jax.lax.broadcasted_iota(jnp.int32, h.shape, 1) + start
            acc_ref[...] += jnp.sum(jnp.where(col < s_valid, h, 0.0),
                                    axis=1, keepdims=True)
    else:
        acc_ref[...] += jnp.sum(h, axis=1, keepdims=True)

    @pl.when(k == nbi - 1)
    def _():
        # avg_pool: the 1/S mean folded into one scalar multiply.
        o_ref[...] = (acc_ref[...] * inv_s).astype(o_ref.dtype)


def x3d_epilogue_kernel(pooled_ref, w2_ref, wp_ref, bp_ref, o_ref):
    """lin_5 + ReLU + projection (bias) + softmax, batched over B."""
    f = jnp.maximum(
        jnp.dot(pooled_ref[...], w2_ref[...], preferred_element_type=jnp.float32),
        0.0)                                                     # (B, Dout_p)
    logits = jnp.dot(f, wp_ref[...],
                     preferred_element_type=jnp.float32) + bp_ref[...]
    m = jnp.max(logits, axis=-1, keepdims=True)
    e = jnp.exp(logits - m)
    # Exact divide (not approx reciprocal) so rows sum to 1 tightly.
    o_ref[...] = (e / jnp.sum(e, axis=-1, keepdims=True)).astype(o_ref.dtype)


def x3d_head_forward(x_ncthw, w1, bn_scale, bn_bias, w2, wp, bp):
    """x_ncthw: (B, C_in, T, H, W).  Params (torch layouts, squeezed):
       w1 (C_in, dim_inner), bn_scale/bn_bias (dim_inner,) [eval-folded BN],
       w2 (dim_inner, dim_out), wp (dim_out, num_classes), bp (num_classes,)."""
    B, C, T, H, W = x_ncthw.shape
    S = T * H * W
    dim_inner = w1.shape[1]
    dim_out = w2.shape[1]
    num_classes = wp.shape[1]

    Din_p = _round_up(dim_inner, 128)
    Dout_p = _round_up(dim_out, 128)
    NC_p = _round_up(num_classes, 128)

    # (B, C, S) is a free reshape of contiguous NCTHW: no pad, no cast, no
    # extra HBM pass over the dominant activation.
    x = x_ncthw.reshape(B, C, S)

    # Fold BN scale into conv_5 weight, transpose once to (Din_p, C) so the hot
    # matmul is canonical; padded inner channels get zero weight + zero bias.
    w1t = jnp.pad((w1 * bn_scale[None, :]).T.astype(jnp.bfloat16),
                  ((0, Din_p - dim_inner), (0, 0)))
    biasc = jnp.pad(bn_bias.astype(jnp.float32),
                    (0, Din_p - dim_inner)).reshape(Din_p, 1)
    # Epilogue params (kept out of the hot kernel entirely). Padded wp columns
    # are exactly zero and bp carries -1e30 so padded classes get probability 0.
    w2p = jnp.pad(w2.astype(jnp.float32),
                  ((0, Din_p - dim_inner), (0, Dout_p - dim_out)))
    wpp = jnp.pad(wp.astype(jnp.float32),
                  ((0, Dout_p - dim_out), (0, NC_p - num_classes)))
    bpp = jnp.pad(bp.astype(jnp.float32)[None, :],
                  ((0, 0), (0, NC_p - num_classes)), constant_values=-1e30)

    # S tile: large (up to 1024) and independent of S's divisibility; either a
    # 128-multiple or the full S extent (satisfies the (8,128) block rule).
    if S >= 1024:
        tile_s = 1024
    elif S >= 128:
        tile_s = (S // 128) * 128
    else:
        tile_s = S
    n_s = pl.cdiv(S, tile_s)

    # v7x B==1: split the S reduction across both TensorCores via a second
    # "parallel" grid axis; partials are combined before the epilogue.
    n_split = 2 if (B == 1 and n_s >= 2) else 1
    nbi = pl.cdiv(n_s, n_split)
    ragged = (n_s * tile_s != S) or (n_split * nbi != n_s)

    if n_split > 1:
        # Clamp so fully-out-of-range blocks still DMA in-bounds; their
        # contribution is masked to zero in-kernel.
        x_index = lambda b, p, k: (b, 0, jnp.minimum(p * nbi + k, n_s - 1))
    else:
        x_index = lambda b, p, k: (b, 0, k)

    # Scoped-VMEM estimate (double-buffered x tile, resident weights, the f32 h
    # intermediate, acc + out) with margin; capped at 48 MiB for v7x headroom.
    lane = 128
    est = (2 * C * tile_s * 4
           + 2 * Din_p * _round_up(C, lane) * 2
           + 2 * Din_p * lane * 4
           + Din_p * tile_s * 4
           + Din_p * lane * 4
           + 2 * Din_p * lane * 4)
    vmem_limit = int(min(max(2 * est, 8 * 1024 * 1024), 48 * 1024 * 1024))

    pool_kernel = functools.partial(
        x3d_pool_kernel, s_valid=S, inv_s=1.0 / S, ragged=ragged)

    pooled_part = pl.pallas_call(
        pool_kernel,
        out_shape=jax.ShapeDtypeStruct((B, n_split, Din_p, 1), jnp.float32),
        grid=(B, n_split, nbi),
        in_specs=[
            pl.BlockSpec((None, C, tile_s), x_index),              # x tile
            pl.BlockSpec((Din_p, C), lambda b, p, k: (0, 0)),      # w1t (folded)
            pl.BlockSpec((Din_p, 1), lambda b, p, k: (0, 0)),      # bn bias
        ],
        out_specs=pl.BlockSpec((None, None, Din_p, 1),
                               lambda b, p, k: (b, p, 0, 0)),
        scratch_shapes=[pltpu.VMEM((Din_p, 1), jnp.float32)],
        compiler_params=pltpu.CompilerParams(
            dimension_semantics=("parallel", "parallel", "arbitrary"),
            vmem_limit_bytes=vmem_limit),
    )(x, w1t, biasc)

    # Combine core-split partials (each already carries the 1/S factor).
    pooled = jnp.sum(pooled_part.reshape(B, n_split, Din_p), axis=1)  # (B, Din_p)

    # Tiny whole-batch epilogue kernel (single block, everything fits in VMEM).
    out_pad = pl.pallas_call(
        x3d_epilogue_kernel,
        out_shape=jax.ShapeDtypeStruct((B, NC_p), jnp.float32),
    )(pooled, w2p, wpp, bpp)

    return out_pad[:, :num_classes]


def x3d_head_reference(x_ncthw, w1, bn_scale, bn_bias, w2, wp, bp):
    """Pure-JAX reference mirroring the PyTorch eval-mode forward (conv_5 inputs
    cast to bf16 to match the kernel's MXU input precision; f32 accumulate)."""
    B, C, T, H, W = x_ncthw.shape
    x = jnp.transpose(x_ncthw, (0, 2, 3, 4, 1)).reshape(B, T * H * W, C)
    xb = x.astype(jnp.bfloat16).astype(jnp.float32)
    w1b = (w1 * bn_scale[None, :]).astype(jnp.bfloat16).astype(jnp.float32)
    h = jnp.maximum(jnp.einsum('bsc,cd->bsd', xb, w1b) + bn_bias[None, None, :],
                    0.0)
    pooled = jnp.mean(h, axis=1)
    f = jnp.maximum(pooled @ w2, 0.0)
    logits = f @ wp + bp[None, :]
    return jax.nn.softmax(logits, axis=-1)


def _run_case(key, B, C_in, T, H, W, dim_inner, dim_out, num_classes):
    eps = 1e-5
    ks = jax.random.split(key, 8)
    x = jax.random.normal(ks[0], (B, C_in, T, H, W), jnp.float32)

    # conv_5 weight: torch (dim_inner, dim_in, 1, 1, 1) -> (C_in, dim_inner)
    w1 = 0.1 * jax.random.normal(ks[1], (C_in, dim_inner), jnp.float32)

    # BatchNorm3d parameters (eval mode), folded into scale/bias.
    gamma = jax.random.uniform(ks[2], (dim_inner,), jnp.float32, 0.5, 1.5)
    beta = 0.1 * jax.random.normal(ks[3], (dim_inner,), jnp.float32)
    rmean = 0.1 * jax.random.normal(ks[4], (dim_inner,), jnp.float32)
    rvar = jax.random.uniform(ks[5], (dim_inner,), jnp.float32, 0.5, 1.5)
    inv_std = gamma / jnp.sqrt(rvar + eps)
    bn_scale = inv_std
    bn_bias = beta - rmean * inv_std

    # lin_5 weight: torch (dim_out, dim_inner, 1, 1, 1) -> (dim_inner, dim_out)
    w2 = 0.1 * jax.random.normal(ks[6], (dim_inner, dim_out), jnp.float32)
    # projection: torch Linear weight (num_classes, dim_out) -> (dim_out, NC)
    wp = 0.1 * jax.random.normal(ks[7], (dim_out, num_classes), jnp.float32)
    bp = jnp.linspace(-0.1, 0.1, num_classes, dtype=jnp.float32)

    out = x3d_head_forward(x, w1, bn_scale, bn_bias, w2, wp, bp)
    out = jax.block_until_ready(out)

    ref = x3d_head_reference(x, w1, bn_scale, bn_bias, w2, wp, bp)
    assert out.shape == (B, num_classes)
    assert jnp.allclose(out, ref, atol=2e-3, rtol=2e-3), "mismatch vs reference"
    assert jnp.allclose(jnp.sum(out, axis=-1), 1.0, atol=1e-3)


if __name__ == "__main__":
    # dropout_rate = 0.0 -> no dropout module; bn_lin5_on = False -> no lin_5_bn.
    key = jax.random.PRNGKey(0)
    k1, k2 = jax.random.split(key)

    # Small shapes consistent with the module: B=2, dim_in=16, T=H=W=4,
    # dim_inner=32, dim_out=64, num_classes=10.
    _run_case(k1, B=2, C_in=16, T=4, H=4, W=4,
              dim_inner=32, dim_out=64, num_classes=10)

    # Second shape exercising the ragged S tail, the clamped out-of-range block
    # and the B==1 two-way core split (S = 6*7*7 = 294, not a tile multiple).
    _run_case(k2, B=1, C_in=24, T=6, H=7, W=7,
              dim_inner=48, dim_out=80, num_classes=7)

    print("KERNEL_OK")
</pallas_src>

<mosaic_0001>
module attributes {stable_mosaic.version = 11 : i64} {
  func.func @x3d_pool_kernel(%arg0: i32, %arg1: i32, %arg2: i32, %arg3: memref<1x16x64xf32, #tpu.memory_space<vmem>>, %arg4: memref<128x16xbf16, #tpu.memory_space<vmem>>, %arg5: memref<128x1xf32, #tpu.memory_space<vmem>>, %arg6: memref<1x1x128x1xf32, #tpu.memory_space<vmem>>, %arg7: memref<128x1xf32, #tpu.memory_space<vmem>>) attributes {dimension_semantics = [#tpu.dimension_semantics<parallel>, #tpu.dimension_semantics<parallel>, #tpu.dimension_semantics<arbitrary>], iteration_bounds = array<i64: 2, 1, 1>, scalar_prefetch = 0 : i64, scratch_operands = 1 : i64, tpu.core_type = #tpu.core_type<tc>, window_params = [{transform_indices = @transform_0, window_bounds = array<i64: 1, 16, 64>}, {pipeline_mode = #tpu.pipeline_mode<synchronous>, transform_indices = @transform_1, window_bounds = array<i64: 128, 16>}, {pipeline_mode = #tpu.pipeline_mode<synchronous>, transform_indices = @transform_2, window_bounds = array<i64: 128, 1>}, {transform_indices = @transform_3, window_bounds = array<i64: 1, 1, 128, 1>}]} {
    %c0_i32 = arith.constant 0 : i32
    %0 = arith.cmpi eq, %arg2, %c0_i32 : i32
    %1 = arith.extui %0 : i1 to i32
    %c0_i32_0 = arith.constant 0 : i32
    %2 = arith.cmpi ne, %1, %c0_i32_0 : i32
    scf.if %2 {
      %cst_15 = arith.constant 0.000000e+00 : f32
      %21 = vector.broadcast %cst_15 : f32 to vector<128x1xf32>
      %c0_16 = arith.constant 0 : index
      %c0_17 = arith.constant 0 : index
      %22 = vector.load %arg7[%c0_16, %c0_17] : memref<128x1xf32, #tpu.memory_space<vmem>>, vector<128x1xf32>
      tpu.vector_store %arg7[%c0_16, %c0_17], %21 {strides = array<i32>} : memref<128x1xf32, #tpu.memory_space<vmem>>, vector<128x1xf32>,
    } else {
    }
    %c0 = arith.constant 0 : index
    %c0_1 = arith.constant 0 : index
    %c0_2 = arith.constant 0 : index
    %3 = vector.load %arg3[%c0, %c0_1, %c0_2] : memref<1x16x64xf32, #tpu.memory_space<vmem>>, vector<1x16x64xf32>
    %4 = vector.shape_cast %3 : vector<1x16x64xf32> to vector<16x64xf32>
    %5 = arith.truncf %4 : vector<16x64xf32> to vector<16x64xbf16>
    %c0_3 = arith.constant 0 : index
    %c0_4 = arith.constant 0 : index
    %6 = vector.load %arg4[%c0_3, %c0_4] : memref<128x16xbf16, #tpu.memory_space<vmem>>, vector<128x16xbf16>
    %cst = arith.constant dense<0.000000e+00> : vector<128x64xf32>
    %7 = tpu.matmul %6, %5, %cst {dimension_numbers = #tpu.dot_dimension_numbers<[1], [0], [0], [1], [0, 0, 1, 1], [], []>} : vector<128x16xbf16>, vector<16x64xbf16>, vector<128x64xf32> -> vector<128x64xf32>
    %c0_5 = arith.constant 0 : index
    %c0_6 = arith.constant 0 : index
    %8 = vector.load %arg5[%c0_5, %c0_6] : memref<128x1xf32, #tpu.memory_space<vmem>>, vector<128x1xf32>
    %9 = vector.broadcast %8 : vector<128x1xf32> to vector<128x64xf32>
    %10 = arith.addf %7, %9 : vector<128x64xf32>
    %cst_7 = arith.constant 0.000000e+00 : f32
    %11 = vector.broadcast %cst_7 : f32 to vector<128x64xf32>
    %12 = arith.maximumf %10, %11 : vector<128x64xf32>
    %c0_8 = arith.constant 0 : index
    %c0_9 = arith.constant 0 : index
    %13 = vector.load %arg7[%c0_8, %c0_9] : memref<128x1xf32, #tpu.memory_space<vmem>>, vector<128x1xf32>
    %cst_10 = arith.constant dense<0.000000e+00> : vector<128xf32>
    %14 = vector.multi_reduction <add>, %12, %cst_10 [1] : vector<128x64xf32> to vector<128xf32>
    %15 = vector.shape_cast %14 : vector<128xf32> to vector<128x1xf32>
    %16 = arith.addf %13, %15 : vector<128x1xf32>
    %c0_11 = arith.constant 0 : index
    %c0_12 = arith.constant 0 : index
    %17 = vector.load %arg7[%c0_11, %c0_12] : memref<128x1xf32, #tpu.memory_space<vmem>>, vector<128x1xf32>
    tpu.vector_store %arg7[%c0_11, %c0_12], %16 {strides = array<i32>} : memref<128x1xf32, #tpu.memory_space<vmem>>, vector<128x1xf32>,
    %c0_i32_13 = arith.constant 0 : i32
    %18 = arith.cmpi eq, %arg2, %c0_i32_13 : i32
    %19 = arith.extui %18 : i1 to i32
    %c0_i32_14 = arith.constant 0 : i32
    %20 = arith.cmpi ne, %19, %c0_i32_14 : i32
    scf.if %20 {
      %c0_15 = arith.constant 0 : index
      %c0_16 = arith.constant 0 : index
      %21 = vector.load %arg7[%c0_15, %c0_16] : memref<128x1xf32, #tpu.memory_space<vmem>>, vector<128x1xf32>
      %cst_17 = arith.constant 1.562500e-02 : f32
      %22 = vector.broadcast %cst_17 : f32 to vector<128x1xf32>
      %23 = arith.mulf %21, %22 : vector<128x1xf32>
      %c0_18 = arith.constant 0 : index
      %c0_19 = arith.constant 0 : index
      %c0_20 = arith.constant 0 : index
      %c0_21 = arith.constant 0 : index
      %24 = vector.load %arg6[%c0_18, %c0_19, %c0_20, %c0_21] : memref<1x1x128x1xf32, #tpu.memory_space<vmem>>, vector<1x1x128x1xf32>
      %25 = vector.shape_cast %24 : vector<1x1x128x1xf32> to vector<128x1xf32>
      %26 = vector.shape_cast %23 : vector<128x1xf32> to vector<1x1x128x1xf32>
      tpu.vector_store %arg6[%c0_18, %c0_19, %c0_20, %c0_21], %26 {strides = array<i32>} : memref<1x1x128x1xf32, #tpu.memory_space<vmem>>, vector<1x1x128x1xf32>,
    } else {
    }
    return
  }
  func.func @transform_0(%arg0: i32, %arg1: i32, %arg2: i32) -> (i32, i32, i32) {
    %c0_i32 = arith.constant 0 : i32
    %c0_i32_0 = arith.constant 0 : i32
    return %arg0, %c0_i32, %arg2 : i32, i32, i32
  }
  func.func @transform_1(%arg0: i32, %arg1: i32, %arg2: i32) -> (i32, i32) {
    %c0_i32 = arith.constant 0 : i32
    %c0_i32_0 = arith.constant 0 : i32
    %c0_i32_1 = arith.constant 0 : i32
    return %c0_i32, %c0_i32_0 : i32, i32
  }
  func.func @transform_2(%arg0: i32, %arg1: i32, %arg2: i32) -> (i32, i32) {
    %c0_i32 = arith.constant 0 : i32
    %c0_i32_0 = arith.constant 0 : i32
    %c0_i32_1 = arith.constant 0 : i32
    return %c0_i32, %c0_i32_0 : i32, i32
  }
  func.func @transform_3(%arg0: i32, %arg1: i32, %arg2: i32) -> (i32, i32, i32, i32) {
    %c0_i32 = arith.constant 0 : i32
    %c0_i32_0 = arith.constant 0 : i32
    %c0_i32_1 = arith.constant 0 : i32
    return %arg0, %arg1, %c0_i32, %c0_i32_0 : i32, i32, i32, i32
  }
}

</mosaic_0001>

<bundles_post_ra>
// kernel: tpu_custom_call.1
= control target key start
LH: loop header
LB: loop body
LE: loop exit
PB: predicated region body
PF: predicated region fallthrough
CT: control target
= control target key end

     0   :  { %s858_s12 = smov 0   ;;  %s860_s13 = smov 0   ;;  %s1060_s0 = inlined_call_operand.vmem [shape: f32[2,16,64], index: 0, kind: input, shape index: {}]   ;;  %s1061_s1 = inlined_call_operand.vmem [shape: bf16[128,16], index: 1, kind: input, shape index: {}]   ;;  %s1062_s2 = inlined_call_operand.vmem [shape: f32[128,1], index: 2, kind: input, shape index: {}]   ;;  %s1063_s3 = inlined_call_operand.vmem [shape: f32[2,1,128,1], index: 3, kind: output, shape index: {}]  }
   0x1   :  { %s862_s14 = smov 0  }
   0x2 LB: > { %s32_s15 = sadd.s32 1, %s830_s13  ;;  %p723_p0 = scmp.ge.s32.totalorder %s834_s14, 1  ;;  %s834_s14 = sphi %s862_s14, %s13_s14   ;;  %s830_s13 = sphi %s860_s13, %s1065_s13   ;;  %s826_s12 = sphi %s858_s12, %s1064_s12  }
   0x3   : > { %p34_p1 = scmp.ge.s32.totalorder %s32_s15, 2  ;;  %p163_p2 = scmp.lt.s32.totalorder %s834_s14, 3 }
   0x5   : > { %s1067_s15 = smov (%p34_p1, %s32_s15), 0  ;;  %p164_p3 = pnand %p723_p0, %p163_p2 }
   0x6   : > { %p194_p4 = scmp.lt.s32.totalorder (!%p164_p3), %s826_s12, 1 }
   0x7   : > { %167 = sbr.rel (%p164_p3) target bundleno = 330 (0x14a), region = 32 }
   0xc   : > { %v254_v0 = vld [vmem:[%s1062_s2 + $0x10] sm:$0xff]  ;;  %v252_v1 = vld [vmem:[%s1062_s2] sm:$0xff]  ;;  %v836_v2 = vmov 0   ;;  %s1069_s12 = smov (!%p194_p4, %s826_s12), 1  ;;  %v255_v7 = vld [vmem:[%s1062_s2 + $0x18] sm:$0xff]  ;;  %vm388_vm0 = vcmask 130048  }
   0xd   : > { %810 = vset.pattern.permute.xlu1 %v836_v2  ;;  %809 = vset.pattern.permute.xlu0 %v836_v2  ;;  %v256_v3 = vld [vmem:[%s1062_s2 + $0x20] sm:$0xff]  ;;  %s770_s22 = sshll.u32 %s1069_s12, 4  ;;  %v253_v8 = vld [vmem:[%s1062_s2 + $0x8] sm:$0xff]  ;;  %v774_v10 = vld [vmem:[%s1061_s1 + $0x10] sm:$0xff]  ;;  %vm494_vm1 = vcmask 523264   ;;  %vm216_vm2 = vcmask 7168  }
   0xe   : > { %280 = vperm.xlu1 %810, %v254_v0   ;;  %270 = vperm.xlu0 %809, %v252_v1   ;;  %s201_s25 = scalar_lea.vmem %s1060_s0, %s770_s22  ;;  %v772_v9 = vld [vmem:[%s1061_s1] sm:$0xff]  ;;  %v778_v12 = vld [vmem:[%s1061_s1 + $0x30] sm:$0xff]  ;;  %v257_v13 = vld [vmem:[%s1062_s2 + $0x28] sm:$0xff]  ;;  %s771_s22 = sshll.u32 %s1069_s12, 7 }
   0xf   : > { %811 = vset.pattern.permute.xlu2 %v836_v2  ;;  %v233_v4 = vld [vmem:[%s201_s25] sm:$0xff]  ;;  %v234_v5 = vld [vmem:[%s201_s25 + $0x8] sm:$0xff]  ;;  %v259_v14 = vld [vmem:[%s1062_s2 + $0x38] sm:$0xff]  ;;  %s1002_s25 = scalar_lea.vmem %s1063_s3, %s771_s22 }
  0x10   : > { %290 = vperm.xlu2 %811, %v256_v3   ;;  %v235_v6 = vpack.c.bf16 %v234_v5, %v233_v4  ;;  %v776_v11 = vld [vmem:[%s1061_s1 + $0x20] sm:$0xff]  ;;  %v258_v15 = vld [vmem:[%s1062_s2 + $0x30] sm:$0xff]  ;;  %v261_v18 = vld [vmem:[%s1062_s2 + $0x48] sm:$0xff]  ;;  %v837_v3 = vmov 0.0  }
  0x11   : > { %v260_v16 = vld [vmem:[%s1062_s2 + $0x40] sm:$0xff]  ;;  %v262_v17 = vld [vmem:[%s1062_s2 + $0x50] sm:$0xff]  ;;  %v773_v19 = vld [vmem:[%s1061_s1 + $0x8] sm:$0xff]  ;;  %217 = vst.msk [vmem:[#allocation2] sm:$0xff] %vm216_vm2, %v837_v3 }
  0x12   : > { %420 = vmatpush.bf16.msra.mxu0 %v235_v6  ;;  %780 = vmatpush.bf16.msra.mxu1 %v235_v6  ;;  %v775_v20 = vld [vmem:[%s1061_s1 + $0x18] sm:$0xff]  ;;  %v777_v21 = vld [vmem:[%s1061_s1 + $0x28] sm:$0xff]  ;;  %v264_v25 = vld [vmem:[%s1062_s2 + $0x60] sm:$0xff]  ;;  %218 = vst.msk [vmem:[#allocation2 + $0x8] sm:$0xff] %vm216_vm2, %v837_v3 }
  0x13   : > { %781 = vmatpush.bf16.msra.mxu2 %v235_v6  ;;  %782 = vmatpush.bf16.msra.mxu3 %v235_v6  ;;  %v779_v22 = vld [vmem:[%s1061_s1 + $0x38] sm:$0xff]  ;;  %v265_v24 = vld [vmem:[%s1062_s2 + $0x68] sm:$0xff]  ;;  %v266_v26 = vld [vmem:[%s1062_s2 + $0x70] sm:$0xff]  ;;  %219 = vst.msk [vmem:[#allocation2 + $0x10] sm:$0xff] %vm216_vm2, %v837_v3 }
  0x14   : > { %v263_v23 = vld [vmem:[%s1062_s2 + $0x58] sm:$0xff]  ;;  %220 = vst.msk [vmem:[#allocation2 + $0x18] sm:$0xff] %vm216_vm2, %v837_v3 }
  0x15   : > { %760 = vmatmul.msk.bf16.vlgmr.msra.gmra.mxu0 %vm388_vm0, %v772_v9  ;;  %762 = vmatmul.msk.bf16.vlgmr.msra.gmra.mxu1 %vm388_vm0, %v774_v10  ;;  %v267_v27 = vld [vmem:[%s1062_s2 + $0x78] sm:$0xff]  ;;  %221 = vst.msk [vmem:[#allocation2 + $0x20] sm:$0xff] %vm216_vm2, %v837_v3 }
  0x16   : > { %285 = vperm.xlu1 %810, %v255_v7   ;;  %275 = vperm.xlu0 %809, %v253_v8   ;;  %222 = vst.msk [vmem:[#allocation2 + $0x28] sm:$0xff] %vm216_vm2, %v837_v3 }
  0x17   : > { %764 = vmatmul.msk.bf16.vlgmr.msra.gmra.mxu2 %vm388_vm0, %v776_v11  ;;  %766 = vmatmul.msk.bf16.vlgmr.msra.gmra.mxu3 %vm388_vm0, %v778_v12  ;;  %223 = vst.msk [vmem:[#allocation2 + $0x30] sm:$0xff] %vm216_vm2, %v837_v3 }
  0x18   : > { %295 = vperm.xlu2 %811, %v257_v13   ;;  %224 = vst.msk [vmem:[#allocation2 + $0x38] sm:$0xff] %vm216_vm2, %v837_v3 }
  0x19   : > { %225 = vst.msk [vmem:[#allocation2 + $0x40] sm:$0xff] %vm216_vm2, %v837_v3 }
  0x1a   : > { %226 = vst.msk [vmem:[#allocation2 + $0x48] sm:$0xff] %vm216_vm2, %v837_v3 }
  0x1b   : > { %227 = vst.msk [vmem:[#allocation2 + $0x50] sm:$0xff] %vm216_vm2, %v837_v3 }
  0x1c   : > { %228 = vst.msk [vmem:[#allocation2 + $0x58] sm:$0xff] %vm216_vm2, %v837_v3 }
  0x1d   : > { %229 = vst.msk [vmem:[#allocation2 + $0x60] sm:$0xff] %vm216_vm2, %v837_v3 }
  0x1e   : > { %305 = vperm.xlu1 %810, %v259_v14   ;;  %300 = vperm.xlu0 %809, %v258_v15   ;;  %230 = vst.msk [vmem:[#allocation2 + $0x68] sm:$0xff] %vm216_vm2, %v837_v3 }
  0x1f   : > { %231 = vst.msk [vmem:[#allocation2 + $0x70] sm:$0xff] %vm216_vm2, %v837_v3 }
  0x20   : > { %310 = vperm.xlu2 %811, %v260_v16   ;;  %232 = vst.msk [vmem:[#allocation2 + $0x78] sm:$0xff] %vm216_vm2, %v837_v3 }
  0x25   : > { %761 = vmatmul.msk.bf16.gmra.mxu0 %vm388_vm0, %v773_v19  ;;  %763 = vmatmul.msk.bf16.gmra.mxu1 %vm388_vm0, %v775_v20 }
  0x26   : > { %320 = vperm.xlu1 %810, %v262_v17   ;;  %315 = vperm.xlu0 %809, %v261_v18  }
  0x27   : > { %765 = vmatmul.msk.bf16.gmra.mxu2 %vm388_vm0, %v777_v21  ;;  %767 = vmatmul.msk.bf16.gmra.mxu3 %vm388_vm0, %v779_v22 }
  0x28   : > { %325 = vperm.xlu2 %811, %v263_v23  }
  0x2e   : > { %335 = vperm.xlu1 %810, %v265_v24   ;;  %330 = vperm.xlu0 %809, %v264_v25  }
  0x30   : > { %340 = vperm.xlu2 %811, %v266_v26  }
  0x36   : > { %345 = vperm.xlu0 %809, %v267_v27  }
  0x6a   : > { %v291_v29 = vpop.permute.xlu2 %290 }
  0x72   : > { %v296_v32 = vpop.permute.xlu2 %295 }
  0x7a   : > { %v311_v42 = vpop.permute.xlu2 %310 }
  0x80   : > { %v271_v28 = vpop.permute.xlu0 %270  ;;  %v281_v31 = vpop.permute.xlu1 %280 }
  0x82   : > { %v326_v21 = vpop.permute.xlu2 %325 }
  0x88   : > { %v276_v30 = vpop.permute.xlu0 %275  ;;  %v286_v37 = vpop.permute.xlu1 %285 }
  0x90   : > { %v962_v33 = vpop.permute.xlu0 %300  ;;  %v306_v53 = vpop.permute.xlu1 %305 }
  0x92   : > { %v422_v34 = vpop.f32.mrf.mxu0  ;;  %v432_v35 = vpop.f32.mrf.mxu1 }
  0x93   : > { %v423_v36 = vadd.f32 %v422_v34, %v271_v28  ;;  %v433_v40 = vadd.f32 %v432_v35, %v291_v29 }
  0x95   : > { %v462_v38 = vmax.f32 %v423_v36, 0.0  ;;  %v466_v48 = vmax.f32 %v433_v40, 0.0 }
  0x97   : > { %v495_v41 = vsel %vm494_vm1, %v462_v38, 0.0  ;;  %v507_v55 = vsel %vm494_vm1, %v466_v48, 0.0  ;;  %v486_v48 = vld [vmem:[#allocation2 + $0x40] sm:$0xff] }
  0x98   : > { %v316_v39 = vpop.permute.xlu0 %315  ;;  %496 = vadd.xlane.f32.xlu1 %v495_v41  ;;  %v321_v4 = vpop.permute.xlu1 %320 }
  0x9a   : > { %v442_v43 = vpop.f32.mrf.mxu2  ;;  %v452_v44 = vpop.f32.mrf.mxu3 }
  0x9b   : > { %v443_v45 = vadd.f32 %v442_v43, %v311_v42  ;;  %v424_v46 = vpop.f32.mrf.mxu0  ;;  %v434_v47 = vpop.f32.mrf.mxu1 }
  0x9c   : > { %v425_v50 = vadd.f32 %v424_v46, %v276_v30  ;;  %v435_v0 = vadd.f32 %v434_v47, %v296_v32 }
  0x9d   : > { %v470_v49 = vmax.f32 %v443_v45, 0.0  ;;  %v478_v45 = vld [vmem:[#allocation2] sm:$0xff] }
  0x9e   : > { %v463_v58 = vmax.f32 %v425_v50, 0.0  ;;  %v467_v6 = vmax.f32 %v435_v0, 0.0 }
  0x9f   : > { %v519_v52 = vsel %vm494_vm1, %v470_v49, 0.0  ;;  %v482_v49 = vld [vmem:[#allocation2 + $0x20] sm:$0xff] }
  0xa0   : > { %v331_v51 = vpop.permute.xlu0 %330  ;;  %520 = vadd.xlane.f32.xlu2 %v519_v52  ;;  %508 = vadd.xlane.f32.xlu1 %v507_v55  ;;  %v498_v1 = vsel %vm494_vm1, %v463_v58, 0.0  ;;  %v510_v16 = vsel %vm494_vm1, %v467_v6, 0.0  ;;  %v336_v25 = vpop.permute.xlu1 %335  ;;  %v490_v55 = vld [vmem:[#allocation2 + $0x60] sm:$0xff]  ;;  %v488_v6 = vld [vmem:[#allocation2 + $0x50] sm:$0xff] }
  0xa1   : > { %v453_v54 = vadd.f32 %v452_v44, %v331_v51 }
  0xa2   : > { %v444_v57 = vpop.f32.mrf.mxu2  ;;  %v454_v63 = vpop.f32.mrf.mxu3 }
  0xa3   : > { %v474_v56 = vmax.f32 %v453_v54, 0.0  ;;  %v427_v59 = vpop.f32.mrf.mxu0  ;;  %v437_v60 = vpop.f32.mrf.mxu1  ;;  %v445_v61 = vadd.f32 %v444_v57, %v316_v39  ;;  %v455_v26 = vadd.f32 %v454_v63, %v336_v25 }
  0xa4   : > { %v428_v8 = vadd.f32 %v427_v59, %v281_v31  ;;  %v438_v22 = vadd.f32 %v437_v60, %v962_v33  ;;  %v479_v59 = vld [vmem:[#allocation2 + $0x8] sm:$0xff] }
  0xa5   : > { %v531_v62 = vsel %vm494_vm1, %v474_v56, 0.0  ;;  %v471_v2 = vmax.f32 %v445_v61, 0.0  ;;  %v475_v32 = vmax.f32 %v455_v26, 0.0 }
  0xa6   : > { %532 = vadd.xlane.f32.xlu0 %v531_v62  ;;  %v464_v18 = vmax.f32 %v428_v8, 0.0  ;;  %v468_v30 = vmax.f32 %v438_v22, 0.0 }
  0xa7   : > { %v522_v11 = vsel %vm494_vm1, %v471_v2, 0.0  ;;  %v534_v40 = vsel %vm494_vm1, %v475_v32, 0.0 }
  0xa8   : > { %499 = vadd.xlane.f32.xlu2 %v498_v1  ;;  %v501_v24 = vsel %vm494_vm1, %v464_v18, 0.0  ;;  %v346_v33 = vpop.permute.xlu0 %345  ;;  %v513_v36 = vsel %vm494_vm1, %v468_v30, 0.0  ;;  %v487_v1 = vld [vmem:[#allocation2 + $0x48] sm:$0xff]  ;;  %v481_v18 = vld [vmem:[#allocation2 + $0x18] sm:$0xff] }
  0xaa   : > { %v447_v5 = vpop.f32.mrf.mxu2  ;;  %v457_v13 = vpop.f32.mrf.mxu3 }
  0xab   : > { %v448_v7 = vadd.f32 %v447_v5, %v321_v4  ;;  %v429_v9 = vpop.f32.mrf.mxu0  ;;  %v439_v10 = vpop.f32.mrf.mxu1  ;;  %v483_v5 = vld [vmem:[#allocation2 + $0x28] sm:$0xff] }
  0xac   : > { %v430_v14 = vadd.f32 %v429_v9, %v286_v37  ;;  %v440_v15 = vadd.f32 %v439_v10, %v306_v53  ;;  %v341_v37 = vpop.permute.xlu2 %340 }
  0xad   : > { %v472_v12 = vmax.f32 %v448_v7, 0.0  ;;  %v458_v38 = vadd.f32 %v457_v13, %v341_v37 }
  0xae   : > { %523 = vadd.xlane.f32.xlu0 %v522_v11  ;;  %v465_v19 = vmax.f32 %v430_v14, 0.0  ;;  %v469_v20 = vmax.f32 %v440_v15, 0.0  ;;  %v480_v15 = vld [vmem:[#allocation2 + $0x10] sm:$0xff] }
  0xaf   : > { %v525_v17 = vsel %vm494_vm1, %v472_v12, 0.0  ;;  %v476_v42 = vmax.f32 %v458_v38, 0.0 }
  0xb0   : > { %511 = vadd.xlane.f32.xlu2 %v510_v16  ;;  %526 = vadd.xlane.f32.xlu1 %v525_v17  ;;  %v504_v28 = vsel %vm494_vm1, %v465_v19, 0.0  ;;  %v516_v29 = vsel %vm494_vm1, %v469_v20, 0.0  ;;  %v485_v19 = vld [vmem:[#allocation2 + $0x38] sm:$0xff] }
  0xb1   : > { %v537_v44 = vsel %vm494_vm1, %v476_v42, 0.0 }
  0xb2   : > { %v449_v23 = vpop.f32.mrf.mxu2  ;;  %v459_v31 = vpop.f32.mrf.mxu3 }
  0xb3   : > { %v450_v27 = vadd.f32 %v449_v23, %v326_v21  ;;  %v460_v35 = vadd.f32 %v459_v31, %v346_v33  ;;  %v489_v33 = vld [vmem:[#allocation2 + $0x58] sm:$0xff] }
  0xb5   : > { %v473_v34 = vmax.f32 %v450_v27, 0.0  ;;  %v477_v41 = vmax.f32 %v460_v35, 0.0 }
  0xb6   : > { %502 = vadd.xlane.f32.xlu0 %v501_v24 }
  0xb7   : > { %v528_v39 = vsel %vm494_vm1, %v473_v34, 0.0  ;;  %v540_v43 = vsel %vm494_vm1, %v477_v41, 0.0  ;;  %v491_v34 = vld [vmem:[#allocation2 + $0x68] sm:$0xff] }
  0xb8   : > { %505 = vadd.xlane.f32.xlu2 %v504_v28  ;;  %517 = vadd.xlane.f32.xlu1 %v516_v29  ;;  %v484_v29 = vld [vmem:[#allocation2 + $0x30] sm:$0xff] }
  0xbe   : > { %514 = vadd.xlane.f32.xlu0 %v513_v36 }
  0xc0   : > { %529 = vadd.xlane.f32.xlu2 %v528_v39  ;;  %535 = vadd.xlane.f32.xlu1 %v534_v40 }
  0xc6   : > { %541 = vadd.xlane.f32.xlu0 %v540_v43 }
  0xc8   : > { %538 = vadd.xlane.f32.xlu2 %v537_v44  ;;  %v493_v44 = vld [vmem:[#allocation2 + $0x78] sm:$0xff] }
 0x10b   : > { %v497_v46 = vpop.xlane.xlu1 %496 }
 0x10c   : > { %v543_v47 = vadd.f32 %v497_v46, %v478_v45 }
 0x10e   : > { %560 = vst.msk [vmem:[#allocation2] sm:$0xff] %vm216_vm2, %v543_v47 }
 0x113   : > { %v521_v50 = vpop.xlane.xlu2 %520  ;;  %v509_v52 = vpop.xlane.xlu1 %508 }
 0x114   : > { %v551_v51 = vadd.f32 %v521_v50, %v486_v48  ;;  %v547_v53 = vadd.f32 %v509_v52, %v482_v49  ;;  %v492_v48 = vld [vmem:[#allocation2 + $0x70] sm:$0xff] }
 0x115   : > { %v579_v54 = vld [vmem:[#allocation2] sm:$0xff] }
 0x116   : > { %568 = vst.msk [vmem:[#allocation2 + $0x40] sm:$0xff] %vm216_vm2, %v551_v51  ;;  %v595_v56 = vmul.f32 0.015625, %v579_v54 }
 0x117   : > { %564 = vst.msk [vmem:[#allocation2 + $0x20] sm:$0xff] %vm216_vm2, %v547_v53 }
 0x118   : > { %611 = vst.msk [vmem:[%s1002_s25] sm:$0xff] %vm216_vm2, %v595_v56 }
 0x119   : > { %v533_v57 = vpop.xlane.xlu0 %532 }
 0x11a   : > { %v555_v58 = vadd.f32 %v533_v57, %v490_v55 }
 0x11b   : > { %v500_v60 = vpop.xlane.xlu2 %499 }
 0x11c   : > { %572 = vst.msk [vmem:[#allocation2 + $0x60] sm:$0xff] %vm216_vm2, %v555_v58  ;;  %v544_v61 = vadd.f32 %v500_v60, %v479_v59 }
 0x11d   : > { %v587_v62 = vld [vmem:[#allocation2 + $0x40] sm:$0xff] }
 0x11e   : > { %v603_v63 = vmul.f32 0.015625, %v587_v62  ;;  %v583_v0 = vld [vmem:[#allocation2 + $0x20] sm:$0xff]  ;;  %561 = vst.msk [vmem:[#allocation2 + $0x8] sm:$0xff] %vm216_vm2, %v544_v61 }
 0x11f   : > { %v599_v2 = vmul.f32 0.015625, %v583_v0 }
 0x120   : > { %619 = vst.msk [vmem:[%s1002_s25 + $0x40] sm:$0xff] %vm216_vm2, %v603_v63 }
 0x121   : > { %v524_v3 = vpop.xlane.xlu0 %523  ;;  %615 = vst.msk [vmem:[%s1002_s25 + $0x20] sm:$0xff] %vm216_vm2, %v599_v2 }
 0x122   : > { %v552_v4 = vadd.f32 %v524_v3, %v487_v1 }
 0x123   : > { %v591_v7 = vld [vmem:[#allocation2 + $0x60] sm:$0xff]  ;;  %v512_v9 = vpop.xlane.xlu2 %511  ;;  %v527_v10 = vpop.xlane.xlu1 %526 }
 0x124   : > { %v607_v8 = vmul.f32 0.015625, %v591_v7  ;;  %569 = vst.msk [vmem:[#allocation2 + $0x48] sm:$0xff] %vm216_vm2, %v552_v4  ;;  %v548_v11 = vadd.f32 %v512_v9, %v483_v5  ;;  %v553_v12 = vadd.f32 %v527_v10, %v488_v6 }
 0x125   : > { %v580_v13 = vld [vmem:[#allocation2 + $0x8] sm:$0xff] }
 0x126   : > { %623 = vst.msk [vmem:[%s1002_s25 + $0x60] sm:$0xff] %vm216_vm2, %v607_v8  ;;  %v596_v14 = vmul.f32 0.015625, %v580_v13 }
 0x127   : > { %565 = vst.msk [vmem:[#allocation2 + $0x28] sm:$0xff] %vm216_vm2, %v548_v11 }
 0x128   : > { %570 = vst.msk [vmem:[#allocation2 + $0x50] sm:$0xff] %vm216_vm2, %v553_v12 }
 0x129   : > { %612 = vst.msk [vmem:[%s1002_s25 + $0x8] sm:$0xff] %vm216_vm2, %v596_v14  ;;  %v503_v16 = vpop.xlane.xlu0 %502 }
 0x12a   : > { %v545_v17 = vadd.f32 %v503_v16, %v480_v15 }
 0x12b   : > { %v588_v20 = vld [vmem:[#allocation2 + $0x48] sm:$0xff]  ;;  %v506_v22 = vpop.xlane.xlu2 %505  ;;  %v518_v23 = vpop.xlane.xlu1 %517 }
 0x12c   : > { %v604_v21 = vmul.f32 0.015625, %v588_v20  ;;  %562 = vst.msk [vmem:[#allocation2 + $0x10] sm:$0xff] %vm216_vm2, %v545_v17  ;;  %v546_v24 = vadd.f32 %v506_v22, %v481_v18  ;;  %v550_v25 = vadd.f32 %v518_v23, %v485_v19 }
 0x12e   : > { %620 = vst.msk [vmem:[%s1002_s25 + $0x48] sm:$0xff] %vm216_vm2, %v604_v21  ;;  %v584_v26 = vld [vmem:[#allocation2 + $0x28] sm:$0xff] }
 0x12f   : > { %v600_v27 = vmul.f32 0.015625, %v584_v26  ;;  %v589_v28 = vld [vmem:[#allocation2 + $0x50] sm:$0xff]  ;;  %563 = vst.msk [vmem:[#allocation2 + $0x18] sm:$0xff] %vm216_vm2, %v546_v24 }
 0x130   : > { %v605_v30 = vmul.f32 0.015625, %v589_v28  ;;  %567 = vst.msk [vmem:[#allocation2 + $0x38] sm:$0xff] %vm216_vm2, %v550_v25 }
 0x131   : > { %616 = vst.msk [vmem:[%s1002_s25 + $0x28] sm:$0xff] %vm216_vm2, %v600_v27  ;;  %v515_v31 = vpop.xlane.xlu0 %514 }
 0x132   : > { %621 = vst.msk [vmem:[%s1002_s25 + $0x50] sm:$0xff] %vm216_vm2, %v605_v30  ;;  %v549_v32 = vadd.f32 %v515_v31, %v484_v29 }
 0x133   : > { %v581_v35 = vld [vmem:[#allocation2 + $0x10] sm:$0xff]  ;;  %v530_v37 = vpop.xlane.xlu2 %529  ;;  %v536_v38 = vpop.xlane.xlu1 %535 }
 0x134   : > { %v597_v36 = vmul.f32 0.015625, %v581_v35  ;;  %566 = vst.msk [vmem:[#allocation2 + $0x30] sm:$0xff] %vm216_vm2, %v549_v32  ;;  %v554_v39 = vadd.f32 %v530_v37, %v489_v33  ;;  %v556_v40 = vadd.f32 %v536_v38, %v491_v34 }
 0x136   : > { %613 = vst.msk [vmem:[%s1002_s25 + $0x10] sm:$0xff] %vm216_vm2, %v597_v36  ;;  %v582_v41 = vld [vmem:[#allocation2 + $0x18] sm:$0xff] }
 0x137   : > { %v598_v42 = vmul.f32 0.015625, %v582_v41  ;;  %v586_v43 = vld [vmem:[#allocation2 + $0x38] sm:$0xff]  ;;  %571 = vst.msk [vmem:[#allocation2 + $0x58] sm:$0xff] %vm216_vm2, %v554_v39 }
 0x138   : > { %v602_v45 = vmul.f32 0.015625, %v586_v43  ;;  %573 = vst.msk [vmem:[#allocation2 + $0x68] sm:$0xff] %vm216_vm2, %v556_v40 }
 0x139   : > { %614 = vst.msk [vmem:[%s1002_s25 + $0x18] sm:$0xff] %vm216_vm2, %v598_v42  ;;  %v542_v46 = vpop.xlane.xlu0 %541 }
 0x13a   : > { %618 = vst.msk [vmem:[%s1002_s25 + $0x38] sm:$0xff] %vm216_vm2, %v602_v45  ;;  %v558_v47 = vadd.f32 %v542_v46, %v493_v44 }
 0x13b   : > { %v585_v49 = vld [vmem:[#allocation2 + $0x30] sm:$0xff]  ;;  %v539_v51 = vpop.xlane.xlu2 %538 }
 0x13c   : > { %v601_v50 = vmul.f32 0.015625, %v585_v49  ;;  %575 = vst.msk [vmem:[#allocation2 + $0x78] sm:$0xff] %vm216_vm2, %v558_v47  ;;  %v557_v52 = vadd.f32 %v539_v51, %v492_v48 }
 0x13e   : > { %617 = vst.msk [vmem:[%s1002_s25 + $0x30] sm:$0xff] %vm216_vm2, %v601_v50  ;;  %v590_v53 = vld [vmem:[#allocation2 + $0x58] sm:$0xff] }
 0x13f   : > { %v606_v54 = vmul.f32 0.015625, %v590_v53  ;;  %v592_v55 = vld [vmem:[#allocation2 + $0x68] sm:$0xff]  ;;  %574 = vst.msk [vmem:[#allocation2 + $0x70] sm:$0xff] %vm216_vm2, %v557_v52 }
 0x140   : > { %v608_v56 = vmul.f32 0.015625, %v592_v55 }
 0x141   : > { %622 = vst.msk [vmem:[%s1002_s25 + $0x58] sm:$0xff] %vm216_vm2, %v606_v54 }
 0x142   : > { %624 = vst.msk [vmem:[%s1002_s25 + $0x68] sm:$0xff] %vm216_vm2, %v608_v56 }
 0x143   : > { %v594_v57 = vld [vmem:[#allocation2 + $0x78] sm:$0xff] }
 0x144   : > { %v610_v58 = vmul.f32 0.015625, %v594_v57 }
 0x146   : > { %626 = vst.msk [vmem:[%s1002_s25 + $0x78] sm:$0xff] %vm216_vm2, %v610_v58  ;;  %v593_v59 = vld [vmem:[#allocation2 + $0x70] sm:$0xff] }
 0x147   : > { %v609_v60 = vmul.f32 0.015625, %v593_v59 }
 0x149   : > { %625 = vst.msk [vmem:[%s1002_s25 + $0x70] sm:$0xff] %vm216_vm2, %v609_v60 }
 0x14a PF: > { %s13_s14 = sadd.s32 1, %s834_s14   ;;  %s1064_s12 = smov %s830_s13 }
 0x14b   : > { %p10_p5 = scmp.ge.s32.totalorder %s13_s14, 4   ;;  %s1065_s13 = smov %s1067_s15 }
 0x14d   :  { %12 = sbr.rel (!%p10_p5) target bundleno = 2 (0x2), region = 70 }

</bundles_post_ra>
